<compile_context>
chip_gen: v7x
topology: tpu7x:2x2x1
jax: 0.10.0
libtpu: 0.0.40
codegen_flags: <defaults>
</compile_context>

<pallas_src>
import functools

import jax
import jax.numpy as jnp
import numpy as np
from jax import lax
from jax.experimental import pallas as pl
from jax.experimental.pallas import tpu as pltpu

# ------------------------- problem sizes (small) -------------------------
VOCAB = 50
VOCAB_PAD = 64           # pad contraction dim of the one-hot matmul to a clean tile
WORD_EMBED = 32          # word_embed_size == hidden_size so per-layer weights stack
HIDDEN = 32
NUM_LAYERS = 2
EMBED_SIZE = 32
BATCH = 8
SEQ = 8


# ------------------------------ Pallas kernel ------------------------------
def qst_encoder_kernel(q_ref, emb_slab_ref, w_big_ref, bias_last_ref,
                       fc_w_ref, fc_b_ref, out_ref, *, hidden, vocab_pad):
    """q_ref:        (B, S)       int32 token ids
       emb_slab_ref: (VPAD, 8H)   per-token additive gate term, interleaved layout
                                  [i0 i1|f0 f1|g0 g1|o0 o1]; layer-0 half holds
                                  tanh(emb)@W_ih0^T + b0, layer-1 half holds b1;
                                  g columns pre-scaled by 2.
       w_big_ref:    (2H, 8H)     block recurrent weight: rows 0:H <- h0, rows H:2H <- h1;
                                  layer-0 cols = [W_hh0^T ; 0], layer-1 cols =
                                  [W_ih1^T ; W_hh1^T]; g columns pre-scaled by 2.
       bias_last_ref:(1, 8H)      additive term for the final wavefront step
                                  (zeros in layer-0 cols, b1 in layer-1 cols, g x2).
       fc_w_ref:     (4H, E)      pre-transposed fc weight (4H == 2*L*H == 128).
       fc_b_ref:     (1, E)
       out_ref:      (B, E)."""
    H = hidden
    batch, seq = q_ref.shape

    # ---- fused embedding lookup + tanh + layer-0 projection + biases ----
    # one_hot(question) @ emb_slab on the MXU, rows ordered time-major (t*B + b)
    # (== PyTorch's .transpose(0, 1)).
    q_t = q_ref[...].T                                                  # (S, B) int32
    lane = lax.broadcasted_iota(jnp.int32, (seq, batch, vocab_pad), 2)
    one_hot = (q_t[:, :, None] == lane).astype(jnp.float32)             # (S, B, VPAD)
    one_hot = one_hot.reshape(seq * batch, vocab_pad)
    slab = jnp.dot(one_hot, emb_slab_ref[...],
                   preferred_element_type=jnp.float32)                  # (S*B, 8H)

    w_big = w_big_ref[...]                                              # (2H, 8H)

    def lstm_update(gates, ccat):
        # gates: (B, 8H) combined pre-activations, ccat: (B, 2H) = [c0 | c1]
        sig = jax.nn.sigmoid(gates)                 # one full-width EUP pass (2 vregs)
        i_g = sig[:, 0 * H:2 * H]                   # [i0 | i1]
        f_g = sig[:, 2 * H:4 * H]                   # [f0 | f1]
        g_g = 2.0 * sig[:, 4 * H:6 * H] - 1.0       # tanh via pre-scaled g columns
        o_g = sig[:, 6 * H:8 * H]                   # [o0 | o1]
        c_new = f_g * ccat + i_g * g_g              # (B, 2H)
        h_new = o_g * jnp.tanh(c_new)               # (B, 2H)
        return h_new, c_new

    zeros_h = jnp.zeros((batch, H), jnp.float32)

    # ---- wavefront step 0: layer 0 only (no recurrent term; states start at 0) ----
    h_new, c_new = lstm_update(slab[0:batch],
                               jnp.zeros((batch, 2 * H), jnp.float32))
    hcat = jnp.concatenate([h_new[:, :H], zeros_h], axis=1)             # [h0_0 | 0]
    ccat = jnp.concatenate([c_new[:, :H], zeros_h], axis=1)             # [c0_0 | 0]

    # ---- wavefront steps 1 .. S-1: layer 0 at t=w, layer 1 at t=w-1 ----
    for w in range(1, seq):                                             # fully unrolled
        recur = jnp.dot(hcat, w_big, preferred_element_type=jnp.float32)  # (B, 8H)
        hcat, ccat = lstm_update(recur + slab[w * batch:(w + 1) * batch], ccat)

    # ---- wavefront step S: layer 1 only (processes h0_{S-1}); layer 0 untouched ----
    recur = jnp.dot(hcat, w_big, preferred_element_type=jnp.float32)
    h_new, c_new = lstm_update(recur + bias_last_ref[...], ccat)

    # feature rows = [h0, c0, h1, c1]  (== cat((h,c),2).transpose(0,1).reshape(B,-1))
    feature = jnp.tanh(jnp.concatenate(
        [hcat[:, :H], ccat[:, :H], h_new[:, H:], c_new[:, H:]], axis=1))  # (B, 4H)
    out_ref[...] = (jnp.dot(feature, fc_w_ref[...],
                            preferred_element_type=jnp.float32)
                    + fc_b_ref[...])


# ------------------------------ wrapper ------------------------------
def qst_encoder(question, packed):
    """question: (batch, seq) int32 token ids; packed: kernel-layout params."""
    batch = question.shape[0]
    kernel = functools.partial(qst_encoder_kernel,
                               hidden=HIDDEN, vocab_pad=VOCAB_PAD)
    vmem = pl.BlockSpec(memory_space=pltpu.MemorySpace.VMEM)
    return pl.pallas_call(
        kernel,
        out_shape=jax.ShapeDtypeStruct((batch, EMBED_SIZE), jnp.float32),
        in_specs=[vmem] * 6,
        out_specs=vmem,
    )(question, packed["emb_slab"], packed["w_big"], packed["bias_last"],
      packed["fc_w_t"], packed["fc_b"])


# ---------------------- param init (PyTorch layout) ----------------------
def init_params(key):
    ks = jax.random.split(key, 8)
    s_lstm = 1.0 / np.sqrt(HIDDEN)
    s_fc = 1.0 / np.sqrt(2 * NUM_LAYERS * HIDDEN)
    return {
        "emb": jax.random.normal(ks[0], (VOCAB, WORD_EMBED), jnp.float32),
        "w_ih": jax.random.uniform(ks[1], (NUM_LAYERS, 4 * HIDDEN, WORD_EMBED),
                                   jnp.float32, -s_lstm, s_lstm),
        "w_hh": jax.random.uniform(ks[2], (NUM_LAYERS, 4 * HIDDEN, HIDDEN),
                                   jnp.float32, -s_lstm, s_lstm),
        "b_ih": jax.random.uniform(ks[3], (NUM_LAYERS, 1, 4 * HIDDEN),
                                   jnp.float32, -s_lstm, s_lstm),
        "b_hh": jax.random.uniform(ks[4], (NUM_LAYERS, 1, 4 * HIDDEN),
                                   jnp.float32, -s_lstm, s_lstm),
        "fc_w": jax.random.uniform(ks[5], (EMBED_SIZE, 2 * NUM_LAYERS * HIDDEN),
                                   jnp.float32, -s_fc, s_fc),
        "fc_b": jax.random.uniform(ks[6], (1, EMBED_SIZE), jnp.float32, -s_fc, s_fc),
    }


def pack_params(p):
    """One-time repack into the kernel layout (wavefront / interleaved-gate form)."""
    H = HIDDEN
    emb_t = jnp.tanh(p["emb"])                       # (V, E)
    w_ih0_t = p["w_ih"][0].T                         # (E, 4H)
    w_ih1_t = p["w_ih"][1].T                         # (H, 4H)
    w_hh0_t = p["w_hh"][0].T                         # (H, 4H)
    w_hh1_t = p["w_hh"][1].T                         # (H, 4H)
    bias0 = (p["b_ih"][0] + p["b_hh"][0])            # (1, 4H)
    bias1 = (p["b_ih"][1] + p["b_hh"][1])            # (1, 4H)

    # layer-0 per-token gate pre-activation: embedding lookup + tanh + W_ih0 + b0
    # folded into a (V, 4H) table (exact: the one-hot matmul selects single rows).
    emb_g0 = emb_t @ w_ih0_t + bias0                 # (V, 4H), gate order i,f,g,o

    def gate_blocks(a):                              # (..., 4H) -> 4 x (..., H)
        return [a[..., k * H:(k + 1) * H] for k in range(4)]

    def interleave(l0, l1):                          # -> [i0 i1|f0 f1|g0 g1|o0 o1]
        b0, b1 = gate_blocks(l0), gate_blocks(l1)
        return jnp.concatenate([b0[0], b1[0], b0[1], b1[1],
                                b0[2], b1[2], b0[3], b1[3]], axis=-1)

    # per-vocab-row additive slab: layer-0 half = emb_g0, layer-1 half = bias1.
    slab = interleave(emb_g0, jnp.broadcast_to(bias1, (VOCAB, 4 * H)))   # (V, 8H)
    slab = jnp.pad(slab, ((0, VOCAB_PAD - VOCAB), (0, 0)))               # (VPAD, 8H)

    # combined recurrent weight: rows 0:H <- h0_prev, rows H:2H <- h1_prev.
    top = interleave(w_hh0_t, w_ih1_t)                                   # (H, 8H)
    bot = interleave(jnp.zeros_like(w_hh1_t), w_hh1_t)                   # (H, 8H)
    w_big = jnp.concatenate([top, bot], axis=0)                          # (2H, 8H)

    # final wavefront step (layer 1 only): b1 in layer-1 cols, zeros in layer-0 cols.
    bias_last = interleave(jnp.zeros((1, 4 * H), jnp.float32), bias1)    # (1, 8H)

    # pre-scale the g-gate columns ([g0 g1] == cols 4H:6H) by 2 so the kernel can
    # use tanh(x) = 2*sigmoid(2x) - 1 with a single sigmoid pass. Applied
    # consistently to the slab (W_ih0 + b0 and b1), W_big (W_hh0, W_ih1, W_hh1)
    # and bias_last, per the review's correctness note.
    def scale_g(a):
        return a.at[..., 4 * H:6 * H].multiply(2.0)

    return {
        "emb_slab":  scale_g(slab),                  # (VPAD, 8H)
        "w_big":     scale_g(w_big),                 # (2H, 8H)
        "bias_last": scale_g(bias_last),             # (1, 8H)
        "fc_w_t":    p["fc_w"].T,                    # (2LH, EMBED_SIZE)
        "fc_b":      p["fc_b"],                      # (1, EMBED_SIZE)
    }


# ---------------------- reference (pure JAX, PyTorch semantics) ----------------------
def qst_encoder_ref(question, params):
    x = jnp.tanh(jnp.take(params["emb"], question, axis=0))     # (B,S,E)
    x = jnp.transpose(x, (1, 0, 2))                             # (S,B,E)
    H = HIDDEN
    hs, cs = [], []
    for l in range(NUM_LAYERS):
        h = jnp.zeros((question.shape[0], H), jnp.float32)
        c = jnp.zeros((question.shape[0], H), jnp.float32)
        outs = []
        for t in range(SEQ):
            g = (x[t] @ params["w_ih"][l].T + h @ params["w_hh"][l].T
                 + params["b_ih"][l, 0] + params["b_hh"][l, 0])
            i_g = jax.nn.sigmoid(g[:, :H])
            f_g = jax.nn.sigmoid(g[:, H:2 * H])
            g_g = jnp.tanh(g[:, 2 * H:3 * H])
            o_g = jax.nn.sigmoid(g[:, 3 * H:])
            c = f_g * c + i_g * g_g
            h = o_g * jnp.tanh(c)
            outs.append(h)
        x = jnp.stack(outs)
        hs.append(h)
        cs.append(c)
    feats = []
    for l in range(NUM_LAYERS):
        feats += [hs[l], cs[l]]
    feat = jnp.tanh(jnp.concatenate(feats, axis=1))
    return feat @ params["fc_w"].T + params["fc_b"][0]


if __name__ == "__main__":
    key = jax.random.PRNGKey(0)
    pkey, qkey = jax.random.split(key)
    params = init_params(pkey)
    packed = jax.block_until_ready(pack_params(params))   # one-time repack
    question = jax.random.randint(qkey, (BATCH, SEQ), 0, VOCAB, dtype=jnp.int32)

    out = qst_encoder(question, packed)
    out = jax.block_until_ready(out)

    ref = jax.block_until_ready(qst_encoder_ref(question, params))
    assert out.shape == (BATCH, EMBED_SIZE)
    np.testing.assert_allclose(np.asarray(out), np.asarray(ref), atol=1e-4, rtol=1e-4)
    print("KERNEL_OK")
</pallas_src>

<mosaic_0001>
module attributes {stable_mosaic.version = 11 : i64} {
  func.func @qst_encoder_kernel(%arg0: memref<8x8xi32, #tpu.memory_space<vmem>>, %arg1: memref<64x256xf32, #tpu.memory_space<vmem>>, %arg2: memref<64x256xf32, #tpu.memory_space<vmem>>, %arg3: memref<1x256xf32, #tpu.memory_space<vmem>>, %arg4: memref<128x32xf32, #tpu.memory_space<vmem>>, %arg5: memref<1x32xf32, #tpu.memory_space<vmem>>, %arg6: memref<8x32xf32, #tpu.memory_space<vmem>>) attributes {dimension_semantics = [], scalar_prefetch = 0 : i64, scratch_operands = 0 : i64, tpu.core_type = #tpu.core_type<tc>} {
    %c0 = arith.constant 0 : index
    %c0_0 = arith.constant 0 : index
    %0 = vector.load %arg0[%c0, %c0_0] : memref<8x8xi32, #tpu.memory_space<vmem>>, vector<8x8xi32>
    %1 = tpu.transpose %0, [1, 0] : vector<8x8xi32> -> vector<8x8xi32>
    %2 = tpu.iota {dimensions = array<i32: 2>} : vector<8x8x64xi32>
    %3 = vector.shape_cast %1 : vector<8x8xi32> to vector<8x8x1xi32>
    %4 = vector.broadcast %3 : vector<8x8x1xi32> to vector<8x8x64xi32>
    %5 = arith.cmpi eq, %4, %2 : vector<8x8x64xi32>
    %6 = arith.extui %5 : vector<8x8x64xi1> to vector<8x8x64xi32>
    %7 = arith.sitofp %6 : vector<8x8x64xi32> to vector<8x8x64xf32>
    %8 = vector.shape_cast %7 : vector<8x8x64xf32> to vector<64x64xf32>
    %c0_1 = arith.constant 0 : index
    %c0_2 = arith.constant 0 : index
    %9 = vector.load %arg1[%c0_1, %c0_2] : memref<64x256xf32, #tpu.memory_space<vmem>>, vector<64x256xf32>
    %cst = arith.constant dense<0.000000e+00> : vector<64x256xf32>
    %10 = tpu.matmul %8, %9, %cst {dimension_numbers = #tpu.dot_dimension_numbers<[1], [0], [0], [1], [0, 0, 1, 1], [], []>} : vector<64x64xf32>, vector<64x256xf32>, vector<64x256xf32> -> vector<64x256xf32>
    %c0_3 = arith.constant 0 : index
    %c0_4 = arith.constant 0 : index
    %11 = vector.load %arg2[%c0_3, %c0_4] : memref<64x256xf32, #tpu.memory_space<vmem>>, vector<64x256xf32>
    %cst_5 = arith.constant 0.000000e+00 : f32
    %12 = vector.broadcast %cst_5 : f32 to vector<8x32xf32>
    %13 = vector.extract_strided_slice %10 {offsets = [0, 0], sizes = [8, 256], strides = [1, 1]} : vector<64x256xf32> to vector<8x256xf32>
    %cst_6 = arith.constant 0.000000e+00 : f32
    %14 = vector.broadcast %cst_6 : f32 to vector<8x64xf32>
    %15 = arith.negf %13 : vector<8x256xf32>
    %16 = math.exp %15 : vector<8x256xf32>
    %cst_7 = arith.constant 1.000000e+00 : f32
    %17 = vector.broadcast %cst_7 : f32 to vector<8x256xf32>
    %18 = arith.addf %17, %16 : vector<8x256xf32>
    %19 = arith.divf %17, %18 : vector<8x256xf32>
    %20 = vector.extract_strided_slice %19 {offsets = [0, 0], sizes = [8, 64], strides = [1, 1]} : vector<8x256xf32> to vector<8x64xf32>
    %21 = vector.extract_strided_slice %19 {offsets = [0, 64], sizes = [8, 64], strides = [1, 1]} : vector<8x256xf32> to vector<8x64xf32>
    %22 = vector.extract_strided_slice %19 {offsets = [0, 128], sizes = [8, 64], strides = [1, 1]} : vector<8x256xf32> to vector<8x64xf32>
    %cst_8 = arith.constant 2.000000e+00 : f32
    %23 = vector.broadcast %cst_8 : f32 to vector<8x64xf32>
    %24 = arith.mulf %23, %22 : vector<8x64xf32>
    %cst_9 = arith.constant 1.000000e+00 : f32
    %25 = vector.broadcast %cst_9 : f32 to vector<8x64xf32>
    %26 = arith.subf %24, %25 : vector<8x64xf32>
    %27 = vector.extract_strided_slice %19 {offsets = [0, 192], sizes = [8, 64], strides = [1, 1]} : vector<8x256xf32> to vector<8x64xf32>
    %28 = arith.mulf %21, %14 : vector<8x64xf32>
    %29 = arith.mulf %20, %26 : vector<8x64xf32>
    %30 = arith.addf %28, %29 : vector<8x64xf32>
    %31 = math.tanh %30 : vector<8x64xf32>
    %32 = arith.mulf %27, %31 : vector<8x64xf32>
    %33 = vector.extract_strided_slice %32 {offsets = [0, 0], sizes = [8, 32], strides = [1, 1]} : vector<8x64xf32> to vector<8x32xf32>
    %34 = tpu.concatenate %33, %12 in 1 : vector<8x32xf32>, vector<8x32xf32> -> vector<8x64xf32>
    %35 = vector.extract_strided_slice %30 {offsets = [0, 0], sizes = [8, 32], strides = [1, 1]} : vector<8x64xf32> to vector<8x32xf32>
    %36 = tpu.concatenate %35, %12 in 1 : vector<8x32xf32>, vector<8x32xf32> -> vector<8x64xf32>
    %cst_10 = arith.constant dense<0.000000e+00> : vector<8x256xf32>
    %37 = tpu.matmul %34, %11, %cst_10 {dimension_numbers = #tpu.dot_dimension_numbers<[1], [0], [0], [1], [0, 0, 1, 1], [], []>} : vector<8x64xf32>, vector<64x256xf32>, vector<8x256xf32> -> vector<8x256xf32>
    %38 = vector.extract_strided_slice %10 {offsets = [8, 0], sizes = [8, 256], strides = [1, 1]} : vector<64x256xf32> to vector<8x256xf32>
    %39 = arith.addf %37, %38 : vector<8x256xf32>
    %40 = arith.negf %39 : vector<8x256xf32>
    %41 = math.exp %40 : vector<8x256xf32>
    %cst_11 = arith.constant 1.000000e+00 : f32
    %42 = vector.broadcast %cst_11 : f32 to vector<8x256xf32>
    %43 = arith.addf %42, %41 : vector<8x256xf32>
    %44 = arith.divf %42, %43 : vector<8x256xf32>
    %45 = vector.extract_strided_slice %44 {offsets = [0, 0], sizes = [8, 64], strides = [1, 1]} : vector<8x256xf32> to vector<8x64xf32>
    %46 = vector.extract_strided_slice %44 {offsets = [0, 64], sizes = [8, 64], strides = [1, 1]} : vector<8x256xf32> to vector<8x64xf32>
    %47 = vector.extract_strided_slice %44 {offsets = [0, 128], sizes = [8, 64], strides = [1, 1]} : vector<8x256xf32> to vector<8x64xf32>
    %cst_12 = arith.constant 2.000000e+00 : f32
    %48 = vector.broadcast %cst_12 : f32 to vector<8x64xf32>
    %49 = arith.mulf %48, %47 : vector<8x64xf32>
    %cst_13 = arith.constant 1.000000e+00 : f32
    %50 = vector.broadcast %cst_13 : f32 to vector<8x64xf32>
    %51 = arith.subf %49, %50 : vector<8x64xf32>
    %52 = vector.extract_strided_slice %44 {offsets = [0, 192], sizes = [8, 64], strides = [1, 1]} : vector<8x256xf32> to vector<8x64xf32>
    %53 = arith.mulf %46, %36 : vector<8x64xf32>
    %54 = arith.mulf %45, %51 : vector<8x64xf32>
    %55 = arith.addf %53, %54 : vector<8x64xf32>
    %56 = math.tanh %55 : vector<8x64xf32>
    %57 = arith.mulf %52, %56 : vector<8x64xf32>
    %cst_14 = arith.constant dense<0.000000e+00> : vector<8x256xf32>
    %58 = tpu.matmul %57, %11, %cst_14 {dimension_numbers = #tpu.dot_dimension_numbers<[1], [0], [0], [1], [0, 0, 1, 1], [], []>} : vector<8x64xf32>, vector<64x256xf32>, vector<8x256xf32> -> vector<8x256xf32>
    %59 = vector.extract_strided_slice %10 {offsets = [16, 0], sizes = [8, 256], strides = [1, 1]} : vector<64x256xf32> to vector<8x256xf32>
    %60 = arith.addf %58, %59 : vector<8x256xf32>
    %61 = arith.negf %60 : vector<8x256xf32>
    %62 = math.exp %61 : vector<8x256xf32>
    %cst_15 = arith.constant 1.000000e+00 : f32
    %63 = vector.broadcast %cst_15 : f32 to vector<8x256xf32>
    %64 = arith.addf %63, %62 : vector<8x256xf32>
    %65 = arith.divf %63, %64 : vector<8x256xf32>
    %66 = vector.extract_strided_slice %65 {offsets = [0, 0], sizes = [8, 64], strides = [1, 1]} : vector<8x256xf32> to vector<8x64xf32>
    %67 = vector.extract_strided_slice %65 {offsets = [0, 64], sizes = [8, 64], strides = [1, 1]} : vector<8x256xf32> to vector<8x64xf32>
    %68 = vector.extract_strided_slice %65 {offsets = [0, 128], sizes = [8, 64], strides = [1, 1]} : vector<8x256xf32> to vector<8x64xf32>
    %cst_16 = arith.constant 2.000000e+00 : f32
    %69 = vector.broadcast %cst_16 : f32 to vector<8x64xf32>
    %70 = arith.mulf %69, %68 : vector<8x64xf32>
    %cst_17 = arith.constant 1.000000e+00 : f32
    %71 = vector.broadcast %cst_17 : f32 to vector<8x64xf32>
    %72 = arith.subf %70, %71 : vector<8x64xf32>
    %73 = vector.extract_strided_slice %65 {offsets = [0, 192], sizes = [8, 64], strides = [1, 1]} : vector<8x256xf32> to vector<8x64xf32>
    %74 = arith.mulf %67, %55 : vector<8x64xf32>
    %75 = arith.mulf %66, %72 : vector<8x64xf32>
    %76 = arith.addf %74, %75 : vector<8x64xf32>
    %77 = math.tanh %76 : vector<8x64xf32>
    %78 = arith.mulf %73, %77 : vector<8x64xf32>
    %cst_18 = arith.constant dense<0.000000e+00> : vector<8x256xf32>
    %79 = tpu.matmul %78, %11, %cst_18 {dimension_numbers = #tpu.dot_dimension_numbers<[1], [0], [0], [1], [0, 0, 1, 1], [], []>} : vector<8x64xf32>, vector<64x256xf32>, vector<8x256xf32> -> vector<8x256xf32>
    %80 = vector.extract_strided_slice %10 {offsets = [24, 0], sizes = [8, 256], strides = [1, 1]} : vector<64x256xf32> to vector<8x256xf32>
    %81 = arith.addf %79, %80 : vector<8x256xf32>
    %82 = arith.negf %81 : vector<8x256xf32>
    %83 = math.exp %82 : vector<8x256xf32>
    %cst_19 = arith.constant 1.000000e+00 : f32
    %84 = vector.broadcast %cst_19 : f32 to vector<8x256xf32>
    %85 = arith.addf %84, %83 : vector<8x256xf32>
    %86 = arith.divf %84, %85 : vector<8x256xf32>
    %87 = vector.extract_strided_slice %86 {offsets = [0, 0], sizes = [8, 64], strides = [1, 1]} : vector<8x256xf32> to vector<8x64xf32>
    %88 = vector.extract_strided_slice %86 {offsets = [0, 64], sizes = [8, 64], strides = [1, 1]} : vector<8x256xf32> to vector<8x64xf32>
    %89 = vector.extract_strided_slice %86 {offsets = [0, 128], sizes = [8, 64], strides = [1, 1]} : vector<8x256xf32> to vector<8x64xf32>
    %cst_20 = arith.constant 2.000000e+00 : f32
    %90 = vector.broadcast %cst_20 : f32 to vector<8x64xf32>
    %91 = arith.mulf %90, %89 : vector<8x64xf32>
    %cst_21 = arith.constant 1.000000e+00 : f32
    %92 = vector.broadcast %cst_21 : f32 to vector<8x64xf32>
    %93 = arith.subf %91, %92 : vector<8x64xf32>
    %94 = vector.extract_strided_slice %86 {offsets = [0, 192], sizes = [8, 64], strides = [1, 1]} : vector<8x256xf32> to vector<8x64xf32>
    %95 = arith.mulf %88, %76 : vector<8x64xf32>
    %96 = arith.mulf %87, %93 : vector<8x64xf32>
    %97 = arith.addf %95, %96 : vector<8x64xf32>
    %98 = math.tanh %97 : vector<8x64xf32>
    %99 = arith.mulf %94, %98 : vector<8x64xf32>
    %cst_22 = arith.constant dense<0.000000e+00> : vector<8x256xf32>
    %100 = tpu.matmul %99, %11, %cst_22 {dimension_numbers = #tpu.dot_dimension_numbers<[1], [0], [0], [1], [0, 0, 1, 1], [], []>} : vector<8x64xf32>, vector<64x256xf32>, vector<8x256xf32> -> vector<8x256xf32>
    %101 = vector.extract_strided_slice %10 {offsets = [32, 0], sizes = [8, 256], strides = [1, 1]} : vector<64x256xf32> to vector<8x256xf32>
    %102 = arith.addf %100, %101 : vector<8x256xf32>
    %103 = arith.negf %102 : vector<8x256xf32>
    %104 = math.exp %103 : vector<8x256xf32>
    %cst_23 = arith.constant 1.000000e+00 : f32
    %105 = vector.broadcast %cst_23 : f32 to vector<8x256xf32>
    %106 = arith.addf %105, %104 : vector<8x256xf32>
    %107 = arith.divf %105, %106 : vector<8x256xf32>
    %108 = vector.extract_strided_slice %107 {offsets = [0, 0], sizes = [8, 64], strides = [1, 1]} : vector<8x256xf32> to vector<8x64xf32>
    %109 = vector.extract_strided_slice %107 {offsets = [0, 64], sizes = [8, 64], strides = [1, 1]} : vector<8x256xf32> to vector<8x64xf32>
    %110 = vector.extract_strided_slice %107 {offsets = [0, 128], sizes = [8, 64], strides = [1, 1]} : vector<8x256xf32> to vector<8x64xf32>
    %cst_24 = arith.constant 2.000000e+00 : f32
    %111 = vector.broadcast %cst_24 : f32 to vector<8x64xf32>
    %112 = arith.mulf %111, %110 : vector<8x64xf32>
    %cst_25 = arith.constant 1.000000e+00 : f32
    %113 = vector.broadcast %cst_25 : f32 to vector<8x64xf32>
    %114 = arith.subf %112, %113 : vector<8x64xf32>
    %115 = vector.extract_strided_slice %107 {offsets = [0, 192], sizes = [8, 64], strides = [1, 1]} : vector<8x256xf32> to vector<8x64xf32>
    %116 = arith.mulf %109, %97 : vector<8x64xf32>
    %117 = arith.mulf %108, %114 : vector<8x64xf32>
    %118 = arith.addf %116, %117 : vector<8x64xf32>
    %119 = math.tanh %118 : vector<8x64xf32>
    %120 = arith.mulf %115, %119 : vector<8x64xf32>
    %cst_26 = arith.constant dense<0.000000e+00> : vector<8x256xf32>
    %121 = tpu.matmul %120, %11, %cst_26 {dimension_numbers = #tpu.dot_dimension_numbers<[1], [0], [0], [1], [0, 0, 1, 1], [], []>} : vector<8x64xf32>, vector<64x256xf32>, vector<8x256xf32> -> vector<8x256xf32>
    %122 = vector.extract_strided_slice %10 {offsets = [40, 0], sizes = [8, 256], strides = [1, 1]} : vector<64x256xf32> to vector<8x256xf32>
    %123 = arith.addf %121, %122 : vector<8x256xf32>
    %124 = arith.negf %123 : vector<8x256xf32>
    %125 = math.exp %124 : vector<8x256xf32>
    %cst_27 = arith.constant 1.000000e+00 : f32
    %126 = vector.broadcast %cst_27 : f32 to vector<8x256xf32>
    %127 = arith.addf %126, %125 : vector<8x256xf32>
    %128 = arith.divf %126, %127 : vector<8x256xf32>
    %129 = vector.extract_strided_slice %128 {offsets = [0, 0], sizes = [8, 64], strides = [1, 1]} : vector<8x256xf32> to vector<8x64xf32>
    %130 = vector.extract_strided_slice %128 {offsets = [0, 64], sizes = [8, 64], strides = [1, 1]} : vector<8x256xf32> to vector<8x64xf32>
    %131 = vector.extract_strided_slice %128 {offsets = [0, 128], sizes = [8, 64], strides = [1, 1]} : vector<8x256xf32> to vector<8x64xf32>
    %cst_28 = arith.constant 2.000000e+00 : f32
    %132 = vector.broadcast %cst_28 : f32 to vector<8x64xf32>
    %133 = arith.mulf %132, %131 : vector<8x64xf32>
    %cst_29 = arith.constant 1.000000e+00 : f32
    %134 = vector.broadcast %cst_29 : f32 to vector<8x64xf32>
    %135 = arith.subf %133, %134 : vector<8x64xf32>
    %136 = vector.extract_strided_slice %128 {offsets = [0, 192], sizes = [8, 64], strides = [1, 1]} : vector<8x256xf32> to vector<8x64xf32>
    %137 = arith.mulf %130, %118 : vector<8x64xf32>
    %138 = arith.mulf %129, %135 : vector<8x64xf32>
    %139 = arith.addf %137, %138 : vector<8x64xf32>
    %140 = math.tanh %139 : vector<8x64xf32>
    %141 = arith.mulf %136, %140 : vector<8x64xf32>
    %cst_30 = arith.constant dense<0.000000e+00> : vector<8x256xf32>
    %142 = tpu.matmul %141, %11, %cst_30 {dimension_numbers = #tpu.dot_dimension_numbers<[1], [0], [0], [1], [0, 0, 1, 1], [], []>} : vector<8x64xf32>, vector<64x256xf32>, vector<8x256xf32> -> vector<8x256xf32>
    %143 = vector.extract_strided_slice %10 {offsets = [48, 0], sizes = [8, 256], strides = [1, 1]} : vector<64x256xf32> to vector<8x256xf32>
    %144 = arith.addf %142, %143 : vector<8x256xf32>
    %145 = arith.negf %144 : vector<8x256xf32>
    %146 = math.exp %145 : vector<8x256xf32>
    %cst_31 = arith.constant 1.000000e+00 : f32
    %147 = vector.broadcast %cst_31 : f32 to vector<8x256xf32>
    %148 = arith.addf %147, %146 : vector<8x256xf32>
    %149 = arith.divf %147, %148 : vector<8x256xf32>
    %150 = vector.extract_strided_slice %149 {offsets = [0, 0], sizes = [8, 64], strides = [1, 1]} : vector<8x256xf32> to vector<8x64xf32>
    %151 = vector.extract_strided_slice %149 {offsets = [0, 64], sizes = [8, 64], strides = [1, 1]} : vector<8x256xf32> to vector<8x64xf32>
    %152 = vector.extract_strided_slice %149 {offsets = [0, 128], sizes = [8, 64], strides = [1, 1]} : vector<8x256xf32> to vector<8x64xf32>
    %cst_32 = arith.constant 2.000000e+00 : f32
    %153 = vector.broadcast %cst_32 : f32 to vector<8x64xf32>
    %154 = arith.mulf %153, %152 : vector<8x64xf32>
    %cst_33 = arith.constant 1.000000e+00 : f32
    %155 = vector.broadcast %cst_33 : f32 to vector<8x64xf32>
    %156 = arith.subf %154, %155 : vector<8x64xf32>
    %157 = vector.extract_strided_slice %149 {offsets = [0, 192], sizes = [8, 64], strides = [1, 1]} : vector<8x256xf32> to vector<8x64xf32>
    %158 = arith.mulf %151, %139 : vector<8x64xf32>
    %159 = arith.mulf %150, %156 : vector<8x64xf32>
    %160 = arith.addf %158, %159 : vector<8x64xf32>
    %161 = math.tanh %160 : vector<8x64xf32>
    %162 = arith.mulf %157, %161 : vector<8x64xf32>
    %cst_34 = arith.constant dense<0.000000e+00> : vector<8x256xf32>
    %163 = tpu.matmul %162, %11, %cst_34 {dimension_numbers = #tpu.dot_dimension_numbers<[1], [0], [0], [1], [0, 0, 1, 1], [], []>} : vector<8x64xf32>, vector<64x256xf32>, vector<8x256xf32> -> vector<8x256xf32>
    %164 = vector.extract_strided_slice %10 {offsets = [56, 0], sizes = [8, 256], strides = [1, 1]} : vector<64x256xf32> to vector<8x256xf32>
    %165 = arith.addf %163, %164 : vector<8x256xf32>
    %166 = arith.negf %165 : vector<8x256xf32>
    %167 = math.exp %166 : vector<8x256xf32>
    %cst_35 = arith.constant 1.000000e+00 : f32
    %168 = vector.broadcast %cst_35 : f32 to vector<8x256xf32>
    %169 = arith.addf %168, %167 : vector<8x256xf32>
    %170 = arith.divf %168, %169 : vector<8x256xf32>
    %171 = vector.extract_strided_slice %170 {offsets = [0, 0], sizes = [8, 64], strides = [1, 1]} : vector<8x256xf32> to vector<8x64xf32>
    %172 = vector.extract_strided_slice %170 {offsets = [0, 64], sizes = [8, 64], strides = [1, 1]} : vector<8x256xf32> to vector<8x64xf32>
    %173 = vector.extract_strided_slice %170 {offsets = [0, 128], sizes = [8, 64], strides = [1, 1]} : vector<8x256xf32> to vector<8x64xf32>
    %cst_36 = arith.constant 2.000000e+00 : f32
    %174 = vector.broadcast %cst_36 : f32 to vector<8x64xf32>
    %175 = arith.mulf %174, %173 : vector<8x64xf32>
    %cst_37 = arith.constant 1.000000e+00 : f32
    %176 = vector.broadcast %cst_37 : f32 to vector<8x64xf32>
    %177 = arith.subf %175, %176 : vector<8x64xf32>
    %178 = vector.extract_strided_slice %170 {offsets = [0, 192], sizes = [8, 64], strides = [1, 1]} : vector<8x256xf32> to vector<8x64xf32>
    %179 = arith.mulf %172, %160 : vector<8x64xf32>
    %180 = arith.mulf %171, %177 : vector<8x64xf32>
    %181 = arith.addf %179, %180 : vector<8x64xf32>
    %182 = math.tanh %181 : vector<8x64xf32>
    %183 = arith.mulf %178, %182 : vector<8x64xf32>
    %cst_38 = arith.constant dense<0.000000e+00> : vector<8x256xf32>
    %184 = tpu.matmul %183, %11, %cst_38 {dimension_numbers = #tpu.dot_dimension_numbers<[1], [0], [0], [1], [0, 0, 1, 1], [], []>} : vector<8x64xf32>, vector<64x256xf32>, vector<8x256xf32> -> vector<8x256xf32>
    %c0_39 = arith.constant 0 : index
    %c0_40 = arith.constant 0 : index
    %185 = vector.load %arg3[%c0_39, %c0_40] : memref<1x256xf32, #tpu.memory_space<vmem>>, vector<1x256xf32>
    %186 = vector.broadcast %185 : vector<1x256xf32> to vector<8x256xf32>
    %187 = arith.addf %184, %186 : vector<8x256xf32>
    %188 = arith.negf %187 : vector<8x256xf32>
    %189 = math.exp %188 : vector<8x256xf32>
    %cst_41 = arith.constant 1.000000e+00 : f32
    %190 = vector.broadcast %cst_41 : f32 to vector<8x256xf32>
    %191 = arith.addf %190, %189 : vector<8x256xf32>
    %192 = arith.divf %190, %191 : vector<8x256xf32>
    %193 = vector.extract_strided_slice %192 {offsets = [0, 0], sizes = [8, 64], strides = [1, 1]} : vector<8x256xf32> to vector<8x64xf32>
    %194 = vector.extract_strided_slice %192 {offsets = [0, 64], sizes = [8, 64], strides = [1, 1]} : vector<8x256xf32> to vector<8x64xf32>
    %195 = vector.extract_strided_slice %192 {offsets = [0, 128], sizes = [8, 64], strides = [1, 1]} : vector<8x256xf32> to vector<8x64xf32>
    %cst_42 = arith.constant 2.000000e+00 : f32
    %196 = vector.broadcast %cst_42 : f32 to vector<8x64xf32>
    %197 = arith.mulf %196, %195 : vector<8x64xf32>
    %cst_43 = arith.constant 1.000000e+00 : f32
    %198 = vector.broadcast %cst_43 : f32 to vector<8x64xf32>
    %199 = arith.subf %197, %198 : vector<8x64xf32>
    %200 = vector.extract_strided_slice %192 {offsets = [0, 192], sizes = [8, 64], strides = [1, 1]} : vector<8x256xf32> to vector<8x64xf32>
    %201 = arith.mulf %194, %181 : vector<8x64xf32>
    %202 = arith.mulf %193, %199 : vector<8x64xf32>
    %203 = arith.addf %201, %202 : vector<8x64xf32>
    %204 = math.tanh %203 : vector<8x64xf32>
    %205 = arith.mulf %200, %204 : vector<8x64xf32>
    %206 = vector.extract_strided_slice %183 {offsets = [0, 0], sizes = [8, 32], strides = [1, 1]} : vector<8x64xf32> to vector<8x32xf32>
    %207 = vector.extract_strided_slice %181 {offsets = [0, 0], sizes = [8, 32], strides = [1, 1]} : vector<8x64xf32> to vector<8x32xf32>
    %208 = vector.extract_strided_slice %205 {offsets = [0, 32], sizes = [8, 32], strides = [1, 1]} : vector<8x64xf32> to vector<8x32xf32>
    %209 = vector.extract_strided_slice %203 {offsets = [0, 32], sizes = [8, 32], strides = [1, 1]} : vector<8x64xf32> to vector<8x32xf32>
    %210 = tpu.concatenate %206, %207, %208, %209 in 1 : vector<8x32xf32>, vector<8x32xf32>, vector<8x32xf32>, vector<8x32xf32> -> vector<8x128xf32>
    %211 = math.tanh %210 : vector<8x128xf32>
    %c0_44 = arith.constant 0 : index
    %c0_45 = arith.constant 0 : index
    %212 = vector.load %arg4[%c0_44, %c0_45] : memref<128x32xf32, #tpu.memory_space<vmem>>, vector<128x32xf32>
    %cst_46 = arith.constant dense<0.000000e+00> : vector<8x32xf32>
    %213 = tpu.matmul %211, %212, %cst_46 {dimension_numbers = #tpu.dot_dimension_numbers<[1], [0], [0], [1], [0, 0, 1, 1], [], []>} : vector<8x128xf32>, vector<128x32xf32>, vector<8x32xf32> -> vector<8x32xf32>
    %c0_47 = arith.constant 0 : index
    %c0_48 = arith.constant 0 : index
    %214 = vector.load %arg5[%c0_47, %c0_48] : memref<1x32xf32, #tpu.memory_space<vmem>>, vector<1x32xf32>
    %215 = vector.broadcast %214 : vector<1x32xf32> to vector<8x32xf32>
    %216 = arith.addf %213, %215 : vector<8x32xf32>
    %c0_49 = arith.constant 0 : index
    %c0_50 = arith.constant 0 : index
    %217 = vector.load %arg6[%c0_49, %c0_50] : memref<8x32xf32, #tpu.memory_space<vmem>>, vector<8x32xf32>
    tpu.vector_store %arg6[%c0_49, %c0_50], %216 {strides = array<i32>} : memref<8x32xf32, #tpu.memory_space<vmem>>, vector<8x32xf32>,
    return
  }
}

</mosaic_0001>

<bundles_post_ra>
// kernel: tpu_custom_call.1
= control target key start
LH: loop header
LB: loop body
LE: loop exit
PB: predicated region body
PF: predicated region fallthrough
CT: control target
= control target key end

     0   :  { %11 = vsyncpa [#allocation3], 0  ;;  %s2122_s0 = inlined_call_operand.vmem [shape: s32[8,8], index: 0, kind: input, shape index: {}]   ;;  %s2123_s1 = inlined_call_operand.vmem [shape: f32[64,256], index: 1, kind: input, shape index: {}]   ;;  %s2124_s2 = inlined_call_operand.hbm [shape: f32[64,256], index: 2, kind: input, shape index: {}]   ;;  %s2125_s3 = inlined_call_operand.vmem [shape: f32[1,256], index: 3, kind: input, shape index: {}]   ;;  %s2126_s4 = inlined_call_operand.vmem [shape: f32[128,32], index: 4, kind: input, shape index: {}]   ;;  %s2127_s5 = inlined_call_operand.vmem [shape: f32[1,32], index: 5, kind: input, shape index: {}]   ;;  %s2128_s6 = inlined_call_operand.hbm [shape: f32[8,32], index: 6, kind: output, shape index: {}]  }
   0x1   :  { %12 = vsyncpa [#allocation4], 0  ;;  %s1722_s21 = smov [#allocation2]   ;;  %s1674_s25 = scalar_lea.hbm %s2124_s2, 2048 }
   0x2   :  { %s22_s22 = sshll.u32 %s1722_s21, 4  ;;  %p1675_p0 = scmp.ne.s32.totalorder %s2124_s2, %s1674_s25  ;;  %s23_s22 = int_to_ptr.vmem [resolvable:$true] %s22_s22 }
   0x3   :  { %p1678_p1 = scmp.lt.u32.totalorder %s1674_s25, %s2124_s2 }
   0x5   :  { %p1680_p2 = pnand %p1678_p1, %p1675_p0 }
   0x7   :  { %1683 = shalt.err (!%p1680_p2)
}
   0x8   :  { %s1684_s30 = scalar_lea.vmem %s23_s22, 2048  ;;  %p1689_p4 = scmp.lt.s32.totalorder %s23_s22, %s23_s22 }
   0x9   :  { %p1685_p3 = scmp.ne.s32.totalorder %s23_s22, %s1684_s30  ;;  %p1690_p5 = scmp.lt.s32.totalorder %s1684_s30, %s1684_s30 }
   0xb   :  { %p1691_p6 = por %p1690_p5, %p1689_p4 }
   0xd   :  { %p1692_p7 = pnand %p1691_p6, %p1685_p3 }
   0xf   :  { %1695 = shalt.err (!%p1692_p7)
}
  0x10   :  { %s1723_s7 = smov 256   ;;  %s1724_s8 = smov 16  }
  0x11   :  { %28 = dma.hbm_to_vmem [thread:$0]  %s2124_s2, 2048, %s23_s22, [#allocation3], %s1723_s7, %s1723_s7, %s1724_s8  }
  0x12   :  { %1718 = dma.done.wait [#allocation3], 2048  }
  0x13   :  { %1719 = vsyncadd [#allocation3], 4294965248  ;;  %v38_v0 = vld [vmem:[%s2122_s0] sm:$0xff]  ;;  %v154_v1 = vld [vmem:[%s2123_s1 + $0x8] sm:$0xff]  ;;  %v1725_v8 = vmov 0.0   ;;  %v71_v26 = vlaneseq  ;;  %vm169_vm0 = vcmask 523264  }
  0x14   :  { %39 = vxpose.xlu0.b32.start.end [1/1] (short) (narrow) %v38_v0, 8  ;;  %v156_v2 = vld [vmem:[%s2123_s1 + $0x18] sm:$0xff]  ;;  %v153_v3 = vld [vmem:[%s2123_s1] sm:$0xff]  ;;  %v155_v5 = vld [vmem:[%s2123_s1 + $0x10] sm:$0xff]  ;;  %258 = vmatprep.mubr.f32.mxu1 %v1725_v8  ;;  %vm350_vm9 = vcmask 261120   ;;  %s1727_s2 = smov 96  }
  0x15   :  { %v1390_v4 = vpack.c.bf16 %v156_v2, %v154_v1  ;;  %v158_v6 = vld [vmem:[%s2123_s1 + $0x28] sm:$0xff]  ;;  %v160_v7 = vld [vmem:[%s2123_s1 + $0x38] sm:$0xff]  ;;  %527 = vmatprep.mubr.f32.mxu0 %v1725_v8  ;;  %v1392_v9 = vpack.c.bf16 %v155_v5, %v153_v3  ;;  %v157_v11 = vld [vmem:[%s2123_s1 + $0x20] sm:$0xff]  ;;  %v1831_v27 = vshrl.u32 %v71_v26, 7  ;;  %v1839_v31 = vand.u32 127, %v71_v26  ;;  %s1730_s25 = smov [#allocation5]  }
  0x16   :  { %v1394_v10 = vpack.c.bf16 %v160_v7, %v158_v6  ;;  %v159_v12 = vld [vmem:[%s2123_s1 + $0x30] sm:$0xff]  ;;  %v162_v13 = vld [vmem:[%s2123_s1 + $0x48] sm:$0xff]  ;;  %v164_v14 = vld [vmem:[%s2123_s1 + $0x58] sm:$0xff]  ;;  %vm1729_vm10 = vmmov 0   ;;  %vm1174_vm11 = vcmask 785408   ;;  %s1277_s26 = sshll.u32 %s1730_s25, 4  ;;  %s1278_s26 = int_to_ptr.vmem [resolvable:$true] %s1277_s26 }
  0x17   :  { %1391 = vmatprep.subr.bf16.mxu1 %v1390_v4  ;;  %v1396_v15 = vpack.c.bf16 %v159_v12, %v157_v11  ;;  %v1398_v16 = vpack.c.bf16 %v164_v14, %v162_v13  ;;  %v161_v17 = vld [vmem:[%s2123_s1 + $0x40] sm:$0xff]  ;;  %v163_v18 = vld [vmem:[%s2123_s1 + $0x50] sm:$0xff]  ;;  %v166_v19 = vld [vmem:[%s2123_s1 + $0x68] sm:$0xff]  ;;  %v75_v28 = vsub.s32 0, %v1831_v27  ;;  %v82_v47 = vsub.s32 1, %v1831_v27  ;;  %p1701_p9 = scmp.lt.s32.totalorder %s1278_s26, %s1278_s26 }
  0x18   :  { %1393 = vmatpush1.bf16.msra.mxu1 %v1392_v9  ;;  %v168_v20 = vld [vmem:[%s2123_s1 + $0x78] sm:$0xff]  ;;  %v1400_v21 = vpack.c.bf16 %v163_v18, %v161_v17  ;;  %v165_v23 = vld [vmem:[%s2123_s1 + $0x60] sm:$0xff]  ;;  %v167_v24 = vld [vmem:[%s2123_s1 + $0x70] sm:$0xff]  ;;  %s1726_s1 = smov 64   ;;  %v89_v49 = vsub.s32 2, %v1831_v27  ;;  %v96_v51 = vsub.s32 3, %v1831_v27 }
  0x19   :  { %1395 = vmatprep.subr.bf16.mxu1 %v1394_v10  ;;  %v1402_v22 = vpack.c.bf16 %v168_v20, %v166_v19  ;;  %v1404_v25 = vpack.c.bf16 %v167_v24, %v165_v23  ;;  %v103_v53 = vsub.s32 4, %v1831_v27  ;;  %v110_v55 = vsub.s32 5, %v1831_v27  ;;  %v308_v56 = vld [vmem:[#allocation2 + $0x8] sm:$0xff]  ;;  %v310_v57 = vld [vmem:[#allocation2 + $0x18] sm:$0xff]  ;;  %v307_v58 = vld [vmem:[#allocation2] sm:$0xff] }
  0x1a   :  { %v117_v60 = vsub.s32 6, %v1831_v27  ;;  %v1865_v61 = vpack.c.bf16 %v310_v57, %v308_v56  ;;  %v309_v62 = vld [vmem:[#allocation2 + $0x10] sm:$0xff]  ;;  %v312_v63 = vld [vmem:[#allocation2 + $0x28] sm:$0xff]  ;;  %v314_v0 = vld [vmem:[#allocation2 + $0x38] sm:$0xff]  ;;  %v124_v10 = vsub.s32 7, %v1831_v27 }
  0x1b   :  { %v1867_v1 = vpack.c.bf16 %v309_v62, %v307_v58  ;;  %v1869_v2 = vpack.c.bf16 %v314_v0, %v312_v63  ;;  %v311_v3 = vld [vmem:[#allocation2 + $0x20] sm:$0xff]  ;;  %v313_v4 = vld [vmem:[#allocation2 + $0x30] sm:$0xff]  ;;  %v316_v5 = vld [vmem:[#allocation2 + $0x48] sm:$0xff] }
  0x1c   :  { %1397 = vmatpush1.bf16.msra.mxu1 %v1396_v15  ;;  %v318_v6 = vld [vmem:[#allocation2 + $0x58] sm:$0xff]  ;;  %v1873_v7 = vpack.c.bf16 %v313_v4, %v311_v3  ;;  %1423 = vmatprep.subr.bf16.mxu0 %v1865_v61  ;;  %v315_v12 = vld [vmem:[#allocation2 + $0x40] sm:$0xff]  ;;  %v317_v13 = vld [vmem:[#allocation2 + $0x50] sm:$0xff] }
  0x1d   :  { %1399 = vmatprep.subr.bf16.mxu1 %v1398_v16  ;;  %v1879_v11 = vpack.c.bf16 %v318_v6, %v316_v5  ;;  %1425 = vmatpush1.bf16.msra.mxu0 %v1867_v1  ;;  %v320_v14 = vld [vmem:[#allocation2 + $0x68] sm:$0xff]  ;;  %v322_v15 = vld [vmem:[#allocation2 + $0x78] sm:$0xff]  ;;  %v1884_v16 = vpack.c.bf16 %v317_v13, %v315_v12  ;;  %v319_v19 = vld [vmem:[#allocation2 + $0x60] sm:$0xff] }
  0x1e   :  { %1427 = vmatprep.subr.bf16.mxu0 %v1869_v2  ;;  %v1888_v18 = vpack.c.bf16 %v322_v15, %v320_v14  ;;  %v321_v20 = vld [vmem:[#allocation2 + $0x70] sm:$0xff] }
  0x20   :  { %1401 = vmatpush1.bf16.msra.mxu1 %v1400_v21  ;;  %v1893_v21 = vpack.c.bf16 %v321_v20, %v319_v19 }
  0x21   :  { %1403 = vmatprep.subr.bf16.mxu1 %v1402_v22  ;;  %1429 = vmatpush1.bf16.msra.mxu0 %v1873_v7 }
  0x22   :  { %1431 = vmatprep.subr.bf16.mxu0 %v1879_v11 }
  0x24   :  { %1405 = vmatpush1.bf16.msra.mxu1 %v1404_v25 }
  0x25   :  { %1407 = vmatprep.subr.bf16.mxu1 %v1865_v61  ;;  %1433 = vmatpush1.bf16.msra.mxu0 %v1884_v16 }
  0x26   :  { %1435 = vmatprep.subr.bf16.mxu0 %v1888_v18 }
  0x29   :  { %1437 = vmatpush1.bf16.msra.mxu0 %v1893_v21 }
  0x2a   :  { %1439 = vmatprep.subr.bf16.mxu0 %v1865_v61 }
  0x94   :  { %v1834_v29 = vpop.trf.xlu0 }
  0x95   :  { %v76_v30 = vrot.slane %v1834_v29, %v75_v28  ;;  %v83_v48 = vrot.slane %v1834_v29, %v82_v47  ;;  %v90_v50 = vrot.slane %v1834_v29, %v89_v49  ;;  %v97_v52 = vrot.slane %v1834_v29, %v96_v51 }
  0x96   :  { %v104_v54 = vrot.slane %v1834_v29, %v103_v53  ;;  %v111_v59 = vrot.slane %v1834_v29, %v110_v55  ;;  %v118_v9 = vrot.slane %v1834_v29, %v117_v60  ;;  %v125_v17 = vrot.slane %v1834_v29, %v124_v10 }
  0x97   :  { %78 = vbcast.lane.b32.xlu0 %v76_v30, 256 }
 0x109   :  { %v79_v32 = vpop.permute.xlu0 %78 }
 0x10a   :  { %vm129_vm1 = vcmp.eq.s32.totalorder %v79_v32, %v1839_v31 }
 0x10b   :  { %v1286_v33 = vsel %vm129_vm1, 1.0, %v1725_v8 }
 0x10c   :  { %1294 = vmatmul.mubr.msk.f32.vlgmr.msra.gmra.mrb[0].mxu1 %vm169_vm0, %v1286_v33 }
 0x10d   :  { %264 = vmatprep.mubr.f32.mxu1 %v1725_v8  ;;  %1409 = vmatpush1.bf16.msra.mxu1 %v1867_v1 }
 0x10e   :  { %1411 = vmatprep.subr.bf16.mxu1 %v1869_v2 }
 0x111   :  { %1413 = vmatpush1.bf16.msra.mxu1 %v1873_v7 }
 0x112   :  { %1415 = vmatprep.subr.bf16.mxu1 %v1879_v11 }
 0x115   :  { %1417 = vmatpush1.bf16.msra.mxu1 %v1884_v16 }
 0x116   :  { %1419 = vmatprep.subr.bf16.mxu1 %v1888_v18 }
 0x119   :  { %1421 = vmatpush1.bf16.msra.mxu1 %v1893_v21 }
 0x11a   :  { %1519 = vmatprep.subr.bf16.mxu1 %v1865_v61 }
 0x1df   :  { %v260_v34 = vpop.f32.mrb[0].mxu1 }
 0x1e0   :  { %v1302_v35 = vmul.f32 -1.442695, %v260_v34  ;;  %v262_v36 = vpop.f32.mrb[1].mxu1 }
 0x1e1   :  { %v1303_v37 = vmul.f32 -1.442695, %v262_v36 }
 0x1e2   :  { %1582 = vpow2.f32 %v1302_v35 }
 0x1e3   :  { %1584 = vpow2.f32 %v1303_v37 }
 0x1ec   :  { %v1583_v38 = vpop.eup %1582 }
 0x1ed   :  { %v1585_v39 = vpop.eup %1584  ;;  %v329_v41 = vadd.f32 1.0, %v1583_v38 }
 0x1ee   :  { %v330_v40 = vadd.f32 1.0, %v1585_v39 }
 0x1f0   :  { %1586 = vrcp.f32 %v330_v40 }
 0x1f1   :  { %1588 = vrcp.f32 %v329_v41 }
 0x1fa   :  { %v1845_v42 = vpop.eup %1586 }
 0x1fb   :  { %v335_v43 = vmul.f32 2.0, %v1845_v42  ;;  %v1848_v45 = vpop.eup %1588 }
 0x1fc   :  { %v337_v22 = vmul.f32 0.0, %v1848_v45 }
 0x1fd   :  { %v1304_v44 = vadd.f32 -1.0, %v335_v43 }
 0x1ff   :  { %v338_v46 = vmul.f32 %v1848_v45, %v1304_v44 }
 0x201   :  { %340 = vrot.lane.b32.xlu1 %v338_v46, %s1726_s1 }
 0x205   :  { %85 = vbcast.lane.b32.xlu1 %v83_v48, 256 }
 0x209   :  { %92 = vbcast.lane.b32.xlu1 %v90_v50, 256 }
 0x20d   :  { %99 = vbcast.lane.b32.xlu1 %v97_v52, 256 }
 0x211   :  { %106 = vbcast.lane.b32.xlu1 %v104_v54, 256 }
 0x215   :  { %113 = vbcast.lane.b32.xlu1 %v111_v59, 256 }
 0x219   :  { %120 = vbcast.lane.b32.xlu1 %v118_v9, 256 }
 0x21d   :  { %127 = vbcast.lane.b32.xlu1 %v125_v17, 256 }
 0x273   :  { %v341_v23 = vpop.permute.xlu1 %340 }
 0x274   :  { %v343_v24 = vadd.f32 %v341_v23, %v337_v22 }
 0x276   :  { %1590 = vtanh.f32 %v343_v24 }
 0x277   :  { %v86_v25 = vpop.permute.xlu1 %85 }
 0x278   :  { %vm130_vm2 = vcmp.eq.s32.totalorder %v86_v25, %v1839_v31 }
 0x279   :  { %v1287_v26 = vsel %vm130_vm2, 1.0, %v1725_v8 }
 0x27a   :  { %1295 = vmatmul.mubr.msk.f32.gmra.mrb[2].mxu1 %vm169_vm0, %v1287_v26 }
 0x27b   :  { %v93_v29 = vpop.permute.xlu1 %92  ;;  %270 = vmatprep.mubr.f32.mxu1 %v1725_v8 }
 0x27c   :  { %vm131_vm3 = vcmp.eq.s32.totalorder %v93_v29, %v1839_v31 }
 0x27d   :  { %v1288_v30 = vsel %vm131_vm3, 1.0, %v1725_v8 }
 0x27e   :  { %1296 = vmatmul.mubr.msk.f32.gmra.mrb[4].mxu1 %vm169_vm0, %v1288_v30 }
 0x27f   :  { %v100_v32 = vpop.permute.xlu1 %99  ;;  %276 = vmatprep.mubr.f32.mxu1 %v1725_v8 }
 0x280   :  { %v1591_v33 = vpop.eup %1590  ;;  %vm132_vm4 = vcmp.eq.s32.totalorder %v100_v32, %v1839_v31 }
 0x281   :  { %v1289_v34 = vsel %vm132_vm4, 1.0, %v1725_v8  ;;  %v345_v35 = vmul.f32 %v1591_v33, %v1845_v42 }
 0x282   :  { %1297 = vmatmul.mubr.msk.f32.gmra.mrb[6].mxu1 %vm169_vm0, %v1289_v34 }
 0x283   :  { %347 = vrot.lane.b32.xlu1 %v345_v35, %s1726_s1  ;;  %v107_v36 = vpop.permute.xlu1 %106  ;;  %282 = vmatprep.mubr.f32.mxu1 %v1725_v8 }
 0x284   :  { %vm133_vm5 = vcmp.eq.s32.totalorder %v107_v36, %v1839_v31 }
 0x285   :  { %v1290_v37 = vsel %vm133_vm5, 1.0, %v1725_v8 }
 0x286   :  { %1298 = vmatmul.mubr.msk.f32.gmra.mrb[8].mxu1 %vm169_vm0, %v1290_v37 }
 0x287   :  { %353 = vrot.lane.b32.xlu1 %v343_v24, %s1726_s1  ;;  %v114_v38 = vpop.permute.xlu1 %113  ;;  %288 = vmatprep.mubr.f32.mxu1 %v1725_v8 }
 0x288   :  { %vm134_vm6 = vcmp.eq.s32.totalorder %v114_v38, %v1839_v31 }
 0x289   :  { %v1291_v39 = vsel %vm134_vm6, 1.0, %v1725_v8 }
 0x28a   :  { %1299 = vmatmul.mubr.msk.f32.gmra.mrb[10].mxu1 %vm169_vm0, %v1291_v39 }
 0x28b   :  { %v121_v40 = vpop.permute.xlu1 %120  ;;  %294 = vmatprep.mubr.f32.mxu1 %v1725_v8 }
 0x28c   :  { %vm135_vm7 = vcmp.eq.s32.totalorder %v121_v40, %v1839_v31 }
 0x28d   :  { %v1292_v41 = vsel %vm135_vm7, 1.0, %v1725_v8 }
 0x28e   :  { %1300 = vmatmul.mubr.msk.f32.gmra.mrb[12].mxu1 %vm169_vm0, %v1292_v41 }
 0x28f   :  { %v128_v42 = vpop.permute.xlu1 %127  ;;  %300 = vmatprep.mubr.f32.mxu1 %v1725_v8 }
 0x290   :  { %vm136_vm8 = vcmp.eq.s32.totalorder %v128_v42, %v1839_v31 }
 0x291   :  { %v1293_v43 = vsel %vm136_vm8, 1.0, %v1725_v8 }
 0x292   :  { %1301 = vmatmul.mubr.msk.f32.gmra.mrb[14].mxu1 %vm169_vm0, %v1293_v43 }
 0x293   :  { %424 = vmatprep.mubr.f32.mxu1 %v1725_v8 }
 0x2f5   :  { %v348_v44 = vpop.permute.xlu1 %347 }
 0x2f6   :  { %v351_v45 = vsel %vm350_vm9, %v348_v44, 0.0 }
 0x2f7   :  { %1305 = vmatmul.mubr.msk.f32.vlgmr.msra.gmra.mrb[2].mxu1 %vm169_vm0, %v351_v45 }
 0x2f8   :  { %1521 = vmatpush1.bf16.msra.mxu1 %v1867_v1  ;;  %1133 = vmatprep.mubr.f32.mxu1 %v1725_v8 }
 0x2f9   :  { %v354_v46 = vpop.permute.xlu1 %353  ;;  %1523 = vmatprep.subr.bf16.mxu1 %v1869_v2 }
 0x2fa   :  { %v356_v31 = vsel %vm350_vm9, %v354_v46, 0.0 }
 0x2fb   :  { %446 = vrot.lane.b32.xlu1 %v356_v31, %s1726_s1 }
 0x2fc   :  { %1525 = vmatpush1.bf16.msra.mxu1 %v1873_v7 }
 0x2fd   :  { %1527 = vmatprep.subr.bf16.mxu1 %v1879_v11 }
 0x300   :  { %1529 = vmatpush1.bf16.msra.mxu1 %v1884_v16 }
 0x301   :  { %1531 = vmatprep.subr.bf16.mxu1 %v1888_v18 }
 0x304   :  { %1533 = vmatpush1.bf16.msra.mxu1 %v1893_v21 }
 0x351   :  { %v272_v48 = vpop.f32.mrb[4].mxu1 }
 0x352   :  { %v274_v49 = vpop.f32.mrb[5].mxu1 }
 0x355   :  { %v1946_v50 = vpop.f32.mrb[6].mxu1 }
 0x356   :  { %v1948_v51 = vpop.f32.mrb[7].mxu1 }
 0x359   :  { %v1950_v52 = vpop.f32.mrb[8].mxu1 }
 0x35a   :  { %v1952_v53 = vpop.f32.mrb[9].mxu1 }
 0x35d   :  { %v1954_v54 = vpop.f32.mrb[10].mxu1 }
 0x35e   :  { %v1956_v55 = vpop.f32.mrb[11].mxu1 }
 0x361   :  { %v1958_v56 = vpop.f32.mrb[12].mxu1 }
 0x362   :  { %v1960_v57 = vpop.f32.mrb[13].mxu1 }
 0x365   :  { %v1962_v58 = vpop.f32.mrb[14].mxu1 }
 0x366   :  { %v1964_v59 = vpop.f32.mrb[15].mxu1 }
 0x36d   :  { %v447_v15 = vpop.permute.xlu1 %446 }
 0x3ca   :  { %v426_v60 = vpop.f32.mrb[2].mxu1 }
 0x3cb   :  { %v1306_v62 = vmul.f32 -1.442695, %v426_v60  ;;  %v428_v63 = vpop.f32.mrb[3].mxu1 }
 0x3cc   :  { %v1307_v0 = vmul.f32 -1.442695, %v428_v63 }
 0x3cd   :  { %1592 = vpow2.f32 %v1306_v62 }
 0x3ce   :  { %1594 = vpow2.f32 %v1307_v0 }
 0x3d7   :  { %v1593_v3 = vpop.eup %1592 }
 0x3d8   :  { %v1595_v4 = vpop.eup %1594  ;;  %v437_v6 = vadd.f32 1.0, %v1593_v3 }
 0x3d9   :  { %v438_v5 = vadd.f32 1.0, %v1595_v4 }
 0x3db   :  { %1596 = vrcp.f32 %v438_v5 }
 0x3dc   :  { %1598 = vrcp.f32 %v437_v6 }
 0x3e5   :  { %v1597_v9 = vpop.eup %1596 }
 0x3e6   :  { %v443_v10 = vmul.f32 2.0, %v1597_v9  ;;  %v1599_v13 = vpop.eup %1598 }
 0x3e7   :  { %v449_v17 = vmul.f32 %v1599_v13, %v447_v15 }
 0x3e8   :  { %v1308_v12 = vadd.f32 -1.0, %v443_v10 }
 0x3ea   :  { %v450_v14 = vmul.f32 %v1599_v13, %v1308_v12 }
 0x3ec   :  { %452 = vrot.lane.b32.xlu1 %v450_v14, %s1726_s1 }
 0x45e   :  { %v453_v19 = vpop.permute.xlu1 %452 }
 0x45f   :  { %v455_v20 = vadd.f32 %v453_v19, %v449_v17 }
 0x461   :  { %1600 = vtanh.f32 %v455_v20 }
 0x46b   :  { %v1601_v22 = vpop.eup %1600 }
 0x46c   :  { %v457_v23 = vmul.f32 %v1601_v22, %v1597_v9 }
 0x46e   :  { %459 = vrot.lane.b32.xlu0 %v457_v23, %s1726_s1 }
 0x4e0   :  { %v460_v24 = vpop.permute.xlu0 %459 }
 0x4e1   :  { %1309 = vmatmul.mubr.msk.f32.vlgmr.msra.gmra.mrb[0].mxu0 %vm169_vm0, %v460_v24 }
 0x4e2   :  { %1441 = vmatpush1.bf16.msra.mxu0 %v1867_v1  ;;  %626 = vmatprep.mubr.f32.mxu0 %v1725_v8 }
 0x4e3   :  { %1443 = vmatprep.subr.bf16.mxu0 %v1869_v2 }
 0x4e6   :  { %1445 = vmatpush1.bf16.msra.mxu0 %v1873_v7 }
 0x4e7   :  { %1447 = vmatprep.subr.bf16.mxu0 %v1879_v11 }
 0x4ea   :  { %1449 = vmatpush1.bf16.msra.mxu0 %v1884_v16 }
 0x4eb   :  { %1451 = vmatprep.subr.bf16.mxu0 %v1888_v18 }
 0x4ee   :  { %1453 = vmatpush1.bf16.msra.mxu0 %v1893_v21 }
 0x4ef   :  { %1455 = vmatprep.subr.bf16.mxu0 %v1865_v61 }
 0x5b4   :  { %v529_v25 = vpop.f32.mrb[0].mxu0 }
 0x5b5   :  { %v530_v26 = vadd.f32 %v529_v25, %v272_v48  ;;  %v531_v29 = vpop.f32.mrb[1].mxu0 }
 0x5b6   :  { %v532_v30 = vadd.f32 %v531_v29, %v274_v49 }
 0x5b7   :  { %v1310_v32 = vmul.f32 -1.442695, %v530_v26 }
 0x5b8   :  { %v1311_v33 = vmul.f32 -1.442695, %v532_v30 }
 0x5b9   :  { %1602 = vpow2.f32 %v1310_v32 }
 0x5ba   :  { %1604 = vpow2.f32 %v1311_v33 }
 0x5c3   :  { %v1603_v34 = vpop.eup %1602 }
 0x5c4   :  { %v1605_v35 = vpop.eup %1604  ;;  %v540_v37 = vadd.f32 1.0, %v1603_v34 }
 0x5c5   :  { %v541_v36 = vadd.f32 1.0, %v1605_v35 }
 0x5c7   :  { %1606 = vrcp.f32 %v541_v36 }
 0x5c8   :  { %1608 = vrcp.f32 %v540_v37 }
 0x5d1   :  { %v1607_v38 = vpop.eup %1606 }
 0x5d2   :  { %v546_v39 = vmul.f32 2.0, %v1607_v38  ;;  %v1609_v41 = vpop.eup %1608 }
 0x5d3   :  { %v548_v43 = vmul.f32 %v1609_v41, %v455_v20 }
 0x5d4   :  { %v1312_v40 = vadd.f32 -1.0, %v546_v39 }
 0x5d6   :  { %v549_v42 = vmul.f32 %v1609_v41, %v1312_v40 }
 0x5d8   :  { %551 = vrot.lane.b32.xlu1 %v549_v42, %s1726_s1 }
 0x64a   :  { %v552_v44 = vpop.permute.xlu1 %551 }
 0x64b   :  { %v554_v45 = vadd.f32 %v552_v44, %v548_v43 }
 0x64d   :  { %1610 = vtanh.f32 %v554_v45 }
 0x657   :  { %v1611_v46 = vpop.eup %1610 }
 0x658   :  { %v556_v31 = vmul.f32 %v1611_v46, %v1607_v38 }
 0x65a   :  { %558 = vrot.lane.b32.xlu0 %v556_v31, %s1726_s1 }
 0x6cc   :  { %v559_v48 = vpop.permute.xlu0 %558 }
 0x6cd   :  { %1313 = vmatmul.mubr.msk.f32.vlgmr.msra.gmra.mrb[2].mxu0 %vm169_vm0, %v559_v48 }
 0x6ce   :  { %1457 = vmatpush1.bf16.msra.mxu0 %v1867_v1  ;;  %725 = vmatprep.mubr.f32.mxu0 %v1725_v8 }
 0x6cf   :  { %1459 = vmatprep.subr.bf16.mxu0 %v1869_v2 }
 0x6d2   :  { %1461 = vmatpush1.bf16.msra.mxu0 %v1873_v7 }
 0x6d3   :  { %1463 = vmatprep.subr.bf16.mxu0 %v1879_v11 }
 0x6d6   :  { %1465 = vmatpush1.bf16.msra.mxu0 %v1884_v16 }
 0x6d7   :  { %1467 = vmatprep.subr.bf16.mxu0 %v1888_v18 }
 0x6da   :  { %1469 = vmatpush1.bf16.msra.mxu0 %v1893_v21 }
 0x6db   :  { %1471 = vmatprep.subr.bf16.mxu0 %v1865_v61 }
 0x7a0   :  { %v628_v49 = vpop.f32.mrb[2].mxu0 }
 0x7a1   :  { %v629_v60 = vadd.f32 %v628_v49, %v1946_v50  ;;  %v630_v62 = vpop.f32.mrb[3].mxu0 }
 0x7a2   :  { %v631_v63 = vadd.f32 %v630_v62, %v1948_v51 }
 0x7a3   :  { %v1314_v0 = vmul.f32 -1.442695, %v629_v60 }
 0x7a4   :  { %v1315_v3 = vmul.f32 -1.442695, %v631_v63 }
 0x7a5   :  { %1612 = vpow2.f32 %v1314_v0 }
 0x7a6   :  { %1614 = vpow2.f32 %v1315_v3 }
 0x7af   :  { %v1613_v4 = vpop.eup %1612 }
 0x7b0   :  { %v1615_v5 = vpop.eup %1614  ;;  %v639_v9 = vadd.f32 1.0, %v1613_v4 }
 0x7b1   :  { %v640_v6 = vadd.f32 1.0, %v1615_v5 }
 0x7b3   :  { %1616 = vrcp.f32 %v640_v6 }
 0x7b4   :  { %1618 = vrcp.f32 %v639_v9 }
 0x7bd   :  { %v1617_v10 = vpop.eup %1616 }
 0x7be   :  { %v645_v12 = vmul.f32 2.0, %v1617_v10  ;;  %v1619_v14 = vpop.eup %1618 }
 0x7bf   :  { %v647_v50 = vmul.f32 %v1619_v14, %v554_v45 }
 0x7c0   :  { %v1316_v13 = vadd.f32 -1.0, %v645_v12 }
 0x7c2   :  { %v648_v15 = vmul.f32 %v1619_v14, %v1316_v13 }
 0x7c4   :  { %650 = vrot.lane.b32.xlu1 %v648_v15, %s1726_s1 }
 0x836   :  { %v651_v17 = vpop.permute.xlu1 %650 }
 0x837   :  { %v653_v51 = vadd.f32 %v651_v17, %v647_v50 }
 0x839   :  { %1620 = vtanh.f32 %v653_v51 }
 0x843   :  { %v1621_v19 = vpop.eup %1620 }
 0x844   :  { %v655_v20 = vmul.f32 %v1621_v19, %v1617_v10 }
 0x846   :  { %657 = vrot.lane.b32.xlu0 %v655_v20, %s1726_s1 }
 0x8b8   :  { %v658_v22 = vpop.permute.xlu0 %657 }
 0x8b9   :  { %1317 = vmatmul.mubr.msk.f32.vlgmr.msra.gmra.mrb[4].mxu0 %vm169_vm0, %v658_v22 }
 0x8ba   :  { %1473 = vmatpush1.bf16.msra.mxu0 %v1867_v1  ;;  %824 = vmatprep.mubr.f32.mxu0 %v1725_v8 }
 0x8bb   :  { %1475 = vmatprep.subr.bf16.mxu0 %v1869_v2 }
 0x8be   :  { %1477 = vmatpush1.bf16.msra.mxu0 %v1873_v7 }
 0x8bf   :  { %1479 = vmatprep.subr.bf16.mxu0 %v1879_v11 }
 0x8c2   :  { %1481 = vmatpush1.bf16.msra.mxu0 %v1884_v16 }
 0x8c3   :  { %1483 = vmatprep.subr.bf16.mxu0 %v1888_v18 }
 0x8c6   :  { %1485 = vmatpush1.bf16.msra.mxu0 %v1893_v21 }
 0x8c7   :  { %1487 = vmatprep.subr.bf16.mxu0 %v1865_v61 }
 0x98c   :  { %v727_v23 = vpop.f32.mrb[4].mxu0 }
 0x98d   :  { %v728_v24 = vadd.f32 %v727_v23, %v1950_v52  ;;  %v729_v25 = vpop.f32.mrb[5].mxu0 }
 0x98e   :  { %v730_v26 = vadd.f32 %v729_v25, %v1952_v53 }
 0x98f   :  { %v1318_v29 = vmul.f32 -1.442695, %v728_v24 }
 0x990   :  { %v1319_v30 = vmul.f32 -1.442695, %v730_v26 }
 0x991   :  { %1622 = vpow2.f32 %v1318_v29 }
 0x992   :  { %1624 = vpow2.f32 %v1319_v30 }
 0x99b   :  { %v1623_v32 = vpop.eup %1622 }
 0x99c   :  { %v1625_v33 = vpop.eup %1624  ;;  %v738_v35 = vadd.f32 1.0, %v1623_v32 }
 0x99d   :  { %v739_v34 = vadd.f32 1.0, %v1625_v33 }
 0x99f   :  { %1626 = vrcp.f32 %v739_v34 }
 0x9a0   :  { %1628 = vrcp.f32 %v738_v35 }
 0x9a9   :  { %v1627_v36 = vpop.eup %1626 }
 0x9aa   :  { %v744_v37 = vmul.f32 2.0, %v1627_v36  ;;  %v1629_v39 = vpop.eup %1628 }
 0x9ab   :  { %v746_v52 = vmul.f32 %v1629_v39, %v653_v51 }
 0x9ac   :  { %v1320_v38 = vadd.f32 -1.0, %v744_v37 }
 0x9ae   :  { %v747_v40 = vmul.f32 %v1629_v39, %v1320_v38 }
 0x9b0   :  { %749 = vrot.lane.b32.xlu1 %v747_v40, %s1726_s1 }
 0xa22   :  { %v750_v41 = vpop.permute.xlu1 %749 }
 0xa23   :  { %v752_v53 = vadd.f32 %v750_v41, %v746_v52 }
 0xa25   :  { %1630 = vtanh.f32 %v752_v53 }
 0xa2f   :  { %v1631_v42 = vpop.eup %1630 }
 0xa30   :  { %v754_v43 = vmul.f32 %v1631_v42, %v1627_v36 }
 0xa32   :  { %756 = vrot.lane.b32.xlu0 %v754_v43, %s1726_s1 }
 0xaa4   :  { %v757_v44 = vpop.permute.xlu0 %756 }
 0xaa5   :  { %1321 = vmatmul.mubr.msk.f32.vlgmr.msra.gmra.mrb[6].mxu0 %vm169_vm0, %v757_v44 }
 0xaa6   :  { %1489 = vmatpush1.bf16.msra.mxu0 %v1867_v1  ;;  %923 = vmatprep.mubr.f32.mxu0 %v1725_v8 }
 0xaa7   :  { %1491 = vmatprep.subr.bf16.mxu0 %v1869_v2 }
 0xaaa   :  { %1493 = vmatpush1.bf16.msra.mxu0 %v1873_v7 }
 0xaab   :  { %1495 = vmatprep.subr.bf16.mxu0 %v1879_v11 }
 0xaae   :  { %1497 = vmatpush1.bf16.msra.mxu0 %v1884_v16 }
 0xaaf   :  { %1499 = vmatprep.subr.bf16.mxu0 %v1888_v18 }
 0xab2   :  { %1501 = vmatpush1.bf16.msra.mxu0 %v1893_v21 }
 0xab3   :  { %1503 = vmatprep.subr.bf16.mxu0 %v1865_v61 }
 0xb78   :  { %v826_v45 = vpop.f32.mrb[6].mxu0 }
 0xb79   :  { %v827_v46 = vadd.f32 %v826_v45, %v1954_v54  ;;  %v828_v31 = vpop.f32.mrb[7].mxu0 }
 0xb7a   :  { %v829_v48 = vadd.f32 %v828_v31, %v1956_v55 }
 0xb7b   :  { %v1322_v49 = vmul.f32 -1.442695, %v827_v46 }
 0xb7c   :  { %v1323_v60 = vmul.f32 -1.442695, %v829_v48  ;;  %v1052_v48 = vld [vmem:[%s2125_s3] sm:$0x3] }
 0xb7d   :  { %1632 = vpow2.f32 %v1322_v49  ;;  %v1057_v49 = vrot.slane %v1052_v48, %v75_v28 }
 0xb7e   :  { %1634 = vpow2.f32 %v1323_v60  ;;  %v1061_v60 = vrot.slane %v1052_v48, %v82_v47  ;;  %v1177_v47 = vld [vmem:[%s2126_s4] sm:$0xff] }
 0xb87   :  { %v1633_v62 = vpop.eup %1632 }
 0xb88   :  { %v1635_v63 = vpop.eup %1634  ;;  %v837_v3 = vadd.f32 1.0, %v1633_v62 }
 0xb89   :  { %v838_v0 = vadd.f32 1.0, %v1635_v63 }
 0xb8b   :  { %1636 = vrcp.f32 %v838_v0 }
 0xb8c   :  { %1638 = vrcp.f32 %v837_v3 }
 0xb95   :  { %v1637_v4 = vpop.eup %1636 }
 0xb96   :  { %v843_v5 = vmul.f32 2.0, %v1637_v4  ;;  %v1639_v61 = vpop.eup %1638 }
 0xb97   :  { %v845_v54 = vmul.f32 %v1639_v61, %v752_v53 }
 0xb98   :  { %v1324_v6 = vadd.f32 -1.0, %v843_v5 }
 0xb9a   :  { %v846_v9 = vmul.f32 %v1639_v61, %v1324_v6 }
 0xb9c   :  { %848 = vrot.lane.b32.xlu1 %v846_v9, %s1726_s1 }
 0xc0e   :  { %v849_v10 = vpop.permute.xlu1 %848 }
 0xc0f   :  { %v851_v55 = vadd.f32 %v849_v10, %v845_v54 }
 0xc11   :  { %1640 = vtanh.f32 %v851_v55 }
 0xc1b   :  { %v1641_v12 = vpop.eup %1640 }
 0xc1c   :  { %v853_v13 = vmul.f32 %v1641_v12, %v1637_v4 }
 0xc1e   :  { %855 = vrot.lane.b32.xlu0 %v853_v13, %s1726_s1  ;;  %v1178_v13 = vld [vmem:[%s2126_s4 + $0x8] sm:$0xff] }
 0xc90   :  { %v856_v14 = vpop.permute.xlu0 %855 }
 0xc91   :  { %1325 = vmatmul.mubr.msk.f32.vlgmr.msra.gmra.mrb[8].mxu0 %vm169_vm0, %v856_v14  ;;  %v1179_v14 = vld [vmem:[%s2126_s4 + $0x10] sm:$0xff] }
 0xc92   :  { %1505 = vmatpush1.bf16.msra.mxu0 %v1867_v1  ;;  %1022 = vmatprep.mubr.f32.mxu0 %v1725_v8 }
 0xc93   :  { %1507 = vmatprep.subr.bf16.mxu0 %v1869_v2 }
 0xc96   :  { %1509 = vmatpush1.bf16.msra.mxu0 %v1873_v7 }
 0xc97   :  { %1511 = vmatprep.subr.bf16.mxu0 %v1879_v11 }
 0xc9a   :  { %1513 = vmatpush1.bf16.msra.mxu0 %v1884_v16 }
 0xc9b   :  { %1515 = vmatprep.subr.bf16.mxu0 %v1888_v18 }
 0xc9e   :  { %1517 = vmatpush1.bf16.msra.mxu0 %v1893_v21 }
 0xd64   :  { %v925_v15 = vpop.f32.mrb[8].mxu0 }
 0xd65   :  { %v926_v50 = vadd.f32 %v925_v15, %v1958_v56  ;;  %v927_v17 = vpop.f32.mrb[9].mxu0  ;;  %v1728_v15 = vmov 0.0|0.0  }
 0xd66   :  { %v928_v1 = vadd.f32 %v927_v17, %v1960_v57  ;;  %1534 = vmatprep.subr.bf16.mxu1 %v1728_v15  ;;  %v1180_v17 = vld [vmem:[%s2126_s4 + $0x18] sm:$0xff] }
 0xd67   :  { %v1326_v51 = vmul.f32 -1.442695, %v926_v50  ;;  %v1535_v50 = vpack.c.bf16 %v1178_v13, %v1177_v47 }
 0xd68   :  { %v1327_v19 = vmul.f32 -1.442695, %v928_v1  ;;  %v1538_v1 = vpack.c.bf16 %v1180_v17, %v1179_v14 }
 0xd69   :  { %1642 = vpow2.f32 %v1326_v51  ;;  %v1181_v51 = vld [vmem:[%s2126_s4 + $0x20] sm:$0xff] }
 0xd6a   :  { %1644 = vpow2.f32 %v1327_v19  ;;  %v1182_v19 = vld [vmem:[%s2126_s4 + $0x28] sm:$0xff] }
 0xd73   :  { %v1643_v2 = vpop.eup %1642 }
 0xd74   :  { %v1645_v7 = vpop.eup %1644  ;;  %v936_v11 = vadd.f32 1.0, %v1643_v2  ;;  %v1541_v2 = vpack.c.bf16 %v1182_v19, %v1181_v51 }
 0xd75   :  { %v937_v20 = vadd.f32 1.0, %v1645_v7  ;;  %v1183_v7 = vld [vmem:[%s2126_s4 + $0x30] sm:$0xff] }
 0xd77   :  { %1646 = vrcp.f32 %v937_v20  ;;  %v1184_v20 = vld [vmem:[%s2126_s4 + $0x38] sm:$0xff] }
 0xd78   :  { %1648 = vrcp.f32 %v936_v11  ;;  %v1544_v11 = vpack.c.bf16 %v1184_v20, %v1183_v7 }
 0xd81   :  { %v1647_v16 = vpop.eup %1646 }
 0xd82   :  { %v942_v18 = vmul.f32 2.0, %v1647_v16  ;;  %v1649_v21 = vpop.eup %1648 }
 0xd83   :  { %v944_v56 = vmul.f32 %v1649_v21, %v851_v55 }
 0xd84   :  { %v1328_v22 = vadd.f32 -1.0, %v942_v18  ;;  %v1186_v18 = vld [vmem:[%s2126_s4 + $0x48] sm:$0xff] }
 0xd86   :  { %v945_v23 = vmul.f32 %v1649_v21, %v1328_v22 }
 0xd88   :  { %947 = vrot.lane.b32.xlu1 %v945_v23, %s1726_s1 }
 0xdfa   :  { %v948_v24 = vpop.permute.xlu1 %947 }
 0xdfb   :  { %v950_v57 = vadd.f32 %v948_v24, %v944_v56  ;;  %v1187_v24 = vld [vmem:[%s2126_s4 + $0x50] sm:$0xff] }
 0xdfd   :  { %1650 = vtanh.f32 %v950_v57 }
 0xe07   :  { %v1651_v25 = vpop.eup %1650 }
 0xe08   :  { %v952_v26 = vmul.f32 %v1651_v25, %v1647_v16  ;;  %v1185_v16 = vld [vmem:[%s2126_s4 + $0x40] sm:$0xff] }
 0xe09   :  { %v1547_v22 = vpack.c.bf16 %v1186_v18, %v1185_v16 }
 0xe0a   :  { %954 = vrot.lane.b32.xlu0 %v952_v26, %s1726_s1  ;;  %v1189_v26 = vld [vmem:[%s2126_s4 + $0x60] sm:$0xff] }
 0xe7c   :  { %v955_v29 = vpop.permute.xlu0 %954 }
 0xe7d   :  { %1329 = vmatmul.mubr.msk.f32.vlgmr.msra.gmra.mrb[10].mxu0 %vm169_vm0, %v955_v29  ;;  %v1190_v29 = vld [vmem:[%s2126_s4 + $0x68] sm:$0xff] }
 0xf50   :  { %v1024_v30 = vpop.f32.mrb[10].mxu0 }
 0xf51   :  { %v1025_v32 = vadd.f32 %v1024_v30, %v1962_v58  ;;  %v1026_v33 = vpop.f32.mrb[11].mxu0  ;;  %v1553_v30 = vpack.c.bf16 %v1190_v29, %v1189_v26 }
 0xf52   :  { %v1027_v34 = vadd.f32 %v1026_v33, %v1964_v59  ;;  %v1192_v33 = vld [vmem:[%s2126_s4 + $0x78] sm:$0xff] }
 0xf53   :  { %v1330_v35 = vmul.f32 -1.442695, %v1025_v32  ;;  %v1191_v32 = vld [vmem:[%s2126_s4 + $0x70] sm:$0xff] }
 0xf54   :  { %v1331_v36 = vmul.f32 -1.442695, %v1027_v34  ;;  %v1556_v34 = vpack.c.bf16 %v1192_v33, %v1191_v32 }
 0xf55   :  { %1652 = vpow2.f32 %v1330_v35 }
 0xf56   :  { %1654 = vpow2.f32 %v1331_v36 }
 0xf5f   :  { %v1653_v37 = vpop.eup %1652 }
 0xf60   :  { %v1655_v38 = vpop.eup %1654  ;;  %v1035_v40 = vadd.f32 1.0, %v1653_v37 }
 0xf61   :  { %v1036_v39 = vadd.f32 1.0, %v1655_v38 }
 0xf63   :  { %1656 = vrcp.f32 %v1036_v39 }
 0xf64   :  { %1658 = vrcp.f32 %v1035_v40 }
 0xf6d   :  { %v1657_v52 = vpop.eup %1656 }
 0xf6e   :  { %v1041_v41 = vmul.f32 2.0, %v1657_v52  ;;  %v1659_v42 = vpop.eup %1658 }
 0xf6f   :  { %v1043_v58 = vmul.f32 %v1659_v42, %v950_v57  ;;  %v1188_v57 = vld [vmem:[%s2126_s4 + $0x58] sm:$0xff] }
 0xf70   :  { %v1332_v53 = vadd.f32 -1.0, %v1041_v41  ;;  %v1550_v25 = vpack.c.bf16 %v1188_v57, %v1187_v24  ;;  %v1337_v41 = vld [vmem:[%s2127_s5] ss:$0 sm:$0xff] }
 0xf72   :  { %v1044_v43 = vmul.f32 %v1659_v42, %v1332_v53 }
 0xf74   :  { %1046 = vrot.lane.b32.xlu1 %v1044_v43, %s1726_s1 }
 0xfe6   :  { %v1047_v44 = vpop.permute.xlu1 %1046 }
 0xfe7   :  { %v1049_v59 = vadd.f32 %v1047_v44, %v1043_v58 }
 0xfe9   :  { %1660 = vtanh.f32 %v1049_v59 }
 0xff3   :  { %v1661_v45 = vpop.eup %1660 }
 0xff4   :  { %v1051_v46 = vmul.f32 %v1661_v45, %v1657_v52 }
 0xff6   :  { %1065 = vrot.lane.b32.xlu0 %v1051_v46, %s1726_s1 }
 0xffa   :  { %1165 = vrot.lane.b32.xlu0 %v1049_v59, %s1727_s2 }
0x1068   :  { %v2041_v31 = vpop.permute.xlu0 %1065 }
0x1069   :  { %1333 = vmatmul.mubr.msk.f32.vlgmr.msra.gmra.mrb[16].mxu1 %vm169_vm0, %v2041_v31 }
0x106a   :  { %1536 = vmatpush3.bf16.msra.mxu1 %v1535_v50  ;;  %1387 = vmatprep.mubr.msk.f32.mxu1 %vm1729_vm10, %v1725_v8 }
0x106b   :  { %1537 = vmatprep.subr.bf16.mxu1 %v1728_v15 }
0x106c   :  { %v1166_v37 = vpop.permute.xlu0 %1165 }
0x106d   :  { %v1172_v8 = vsel %vm350_vm9, %v2041_v31, %v1166_v37 }
0x106e   :  { %1539 = vmatpush3.bf16.msra.mxu1 %v1538_v1 }
0x106f   :  { %1540 = vmatprep.subr.bf16.mxu1 %v1728_v15 }
0x1072   :  { %1542 = vmatpush3.bf16.msra.mxu1 %v1541_v2 }
0x1073   :  { %1543 = vmatprep.subr.bf16.mxu1 %v1728_v15 }
0x1076   :  { %1545 = vmatpush3.bf16.msra.mxu1 %v1544_v11 }
0x1077   :  { %1546 = vmatprep.subr.bf16.mxu1 %v1728_v15 }
0x107a   :  { %1548 = vmatpush3.bf16.msra.mxu1 %v1547_v22 }
0x107b   :  { %1549 = vmatprep.subr.bf16.mxu1 %v1728_v15 }
0x107e   :  { %1551 = vmatpush3.bf16.msra.mxu1 %v1550_v25 }
0x107f   :  { %1552 = vmatprep.subr.bf16.mxu1 %v1728_v15 }
0x1082   :  { %1554 = vmatpush3.bf16.msra.mxu1 %v1553_v30 }
0x1083   :  { %1555 = vmatprep.subr.bf16.mxu1 %v1728_v15 }
0x1086   :  { %1557 = vmatpush3.bf16.msra.mxu1 %v1556_v34 }
0x113c   :  { %v1135_v62 = vpop.f32.mrb[16].mxu1 }
0x113d   :  { %v1136_v63 = vadd.f32 %v1135_v62, %v1057_v49  ;;  %v1137_v0 = vpop.f32.mrb[17].mxu1 }
0x113e   :  { %v1138_v3 = vadd.f32 %v1137_v0, %v1061_v60 }
0x113f   :  { %v1334_v4 = vmul.f32 -1.442695, %v1136_v63 }
0x1140   :  { %v1335_v5 = vmul.f32 -1.442695, %v1138_v3 }
0x1141   :  { %1662 = vpow2.f32 %v1334_v4 }
0x1142   :  { %1664 = vpow2.f32 %v1335_v5 }
0x114b   :  { %v1663_v6 = vpop.eup %1662 }
0x114c   :  { %v1665_v61 = vpop.eup %1664  ;;  %v1146_v54 = vadd.f32 1.0, %v1663_v6 }
0x114d   :  { %v1147_v9 = vadd.f32 1.0, %v1665_v61 }
0x114f   :  { %1666 = vrcp.f32 %v1147_v9 }
0x1150   :  { %1668 = vrcp.f32 %v1146_v54 }
0x1159   :  { %v1667_v10 = vpop.eup %1666 }
0x115a   :  { %v1152_v55 = vmul.f32 2.0, %v1667_v10  ;;  %v1669_v12 = vpop.eup %1668 }
0x115b   :  { %v1154_v21 = vmul.f32 %v1669_v12, %v1049_v59 }
0x115c   :  { %v1336_v28 = vadd.f32 -1.0, %v1152_v55 }
0x115e   :  { %v1155_v27 = vmul.f32 %v1669_v12, %v1336_v28 }
0x1160   :  { %1157 = vrot.lane.b32.xlu1 %v1155_v27, %s1726_s1 }
0x11d2   :  { %v1158_v23 = vpop.permute.xlu1 %1157 }
0x11d3   :  { %v1160_v56 = vadd.f32 %v1158_v23, %v1154_v21 }
0x11d5   :  { %1670 = vtanh.f32 %v1160_v56 }
0x11df   :  { %v1671_v35 = vpop.eup %1670 }
0x11e0   :  { %v1162_v36 = vmul.f32 %v1671_v35, %v1667_v10 }
0x11e2   :  { %1169 = vrot.lane.b32.xlu1 %v1162_v36, %s1727_s2  ;;  %s1696_s2 = scalar_lea.vmem %s1278_s26, 128 }
0x11e3   :  { %p1697_p8 = scmp.ne.s32.totalorder %s1278_s26, %s1696_s2  ;;  %p1702_p10 = scmp.lt.s32.totalorder %s1696_s2, %s1696_s2 }
0x11e5   :  { %p1703_p11 = por %p1702_p10, %p1701_p9 }
0x11e7   :  { %p1704_p12 = pnand %p1703_p11, %p1697_p8 }
0x1254   :  { %v1170_v38 = vpop.permute.xlu1 %1169 }
0x1255   :  { %v1173_v39 = vsel %vm169_vm0, %v1172_v8, %v1170_v38 }
0x1256   :  { %v1175_v40 = vsel %vm1174_vm11, %v1173_v39, %v1160_v56 }
0x1257   :  { %1672 = vtanh.f32 %v1175_v40 }
0x1261   :  { %v1673_v52 = vpop.eup %1672 }
0x1262   :  { %1388 = vmatmul.mubr.f32.vlgmr.msra.gmra.mrb[18].mxu1 %v1673_v52 }
0x1335   :  { %v1266_v53 = vpop.f32.mrb[18].mxu1 }
0x1336   :  { %v1267_v42 = vadd.f32 %v1337_v41, %v1266_v53  ;;  %v1389_v43 = vpop.f32.mrb[19].mxu1 }
0x1338   :  { %1270 = vst.msk [vmem:[#allocation5] sm:$0xff] %vm350_vm9, %v1267_v42 }
0x1339   :  { %1707 = shalt.err (!%p1704_p12)
}
0x133a   :  { %s1708_s29 = scalar_lea.hbm %s2128_s6, 128 }
0x133b   :  { %p1709_p13 = scmp.ne.s32.totalorder %s2128_s6, %s1708_s29  ;;  %p1712_p0 = scmp.lt.u32.totalorder %s1708_s29, %s2128_s6 }
0x133d   :  { %p1714_p1 = pnand %p1712_p0, %p1709_p13 }
0x133f   :  { %1717 = shalt.err (!%p1714_p1)
}
0x1340   :  { %1280 = dma.vmem_to_hbm [thread:$0]  %s1278_s26, 128, %s2128_s6, [#allocation4]  }
0x1341   :  { %1720 = dma.done.wait [#allocation4], 128  }
0x1342   :  { %1721 = vsyncadd [#allocation4], 4294967168 }
0x1343   :  { %1284 = vsyncpa [#allocation3], 1 }
0x1344   :  { %1285 = vsyncpa [#allocation4], 1 }

</bundles_post_ra>
